<compile_context>
chip_gen: v5e
topology: v5e:2x2
jax: 0.10.0
libtpu: 0.0.40
codegen_flags: <defaults>
</compile_context>

<pallas_src>
import functools

import jax
import jax.numpy as jnp
from jax.experimental import pallas as pl
from jax.experimental.pallas import tpu as pltpu


# ---------------------------------------------------------------------------
# Kernels
# ---------------------------------------------------------------------------
def _pool_kernel(x_ref, sum_ref, *, inv_hw):
    # x_ref:   (1, C, THW)  current spatial tile of one batch element
    # sum_ref: (1, C, 1)    resident fp32 accumulator (same block for all t)
    t = pl.program_id(1)

    @pl.when(t == 0)
    def _init():
        sum_ref[...] = jnp.zeros_like(sum_ref)

    # Cast only inside the reduction; never materialize a full fp32 copy of x.
    sum_ref[...] += jnp.sum(x_ref[...].astype(jnp.float32), axis=-1, keepdims=True)

    @pl.when(t == pl.num_programs(1) - 1)
    def _finalize():
        sum_ref[...] = sum_ref[...] * inv_hw


def _scale_kernel(x_ref, s_ref, o_ref):
    # x_ref: (1, C, THW), s_ref: (1, C, 1) already in x dtype, o_ref: (1, C, THW)
    o_ref[...] = (x_ref[...] * s_ref[...]).astype(o_ref.dtype)


# ---------------------------------------------------------------------------
# Wrapper
# ---------------------------------------------------------------------------
def _pick_hw_tile(hw, c, itemsize, hw_tile=None, target_block_bytes=4 << 20):
    """Lane-dense spatial tile: multiple of 128 (or the full extent), sized so a
    single (1, C, THW) block stays ~<= 4 MiB (fits v7x's 64 MiB VMEM with
    double-buffered in + out)."""
    if hw_tile is not None and hw_tile % 128 == 0 and hw % hw_tile == 0:
        return hw_tile
    if hw % 128 != 0:
        return hw  # full-extent block is always legal
    max_lanes = max(128, ((target_block_bytes // (c * itemsize)) // 128) * 128)
    t = min(hw, max_lanes)
    while hw % t != 0:
        t -= 128
    return t


def se_block_forward(x, w1, b1, w2, b2, *, hw_tile=None):
    """x: (B, C, H, W) NCHW; w1: (C, Cr); b1: (Cr,); w2: (Cr, C); b2: (C,)."""
    B, C, H, W = x.shape
    HW = H * W
    x3 = x.reshape(B, C, HW)

    itemsize = jnp.dtype(x.dtype).itemsize
    thw = _pick_hw_tile(HW, C, itemsize, hw_tile=hw_tile)
    num_t = HW // thw

    block_bytes = C * thw * itemsize
    vmem_bytes = int(min(64 << 20, max(8 << 20, 8 * block_bytes)))

    # -------- pass 1: global average pool (reduction over spatial tiles) -----
    pooled = pl.pallas_call(
        functools.partial(_pool_kernel, inv_hw=1.0 / HW),
        out_shape=jax.ShapeDtypeStruct((B, C, 1), jnp.float32),
        grid=(B, num_t),
        in_specs=[pl.BlockSpec((1, C, thw), lambda b, t: (b, 0, t))],
        out_specs=pl.BlockSpec((1, C, 1), lambda b, t: (b, 0, 0)),
        compiler_params=pltpu.CompilerParams(
            dimension_semantics=("parallel", "arbitrary"),
            vmem_limit_bytes=vmem_bytes,
        ),
    )(x3)

    # -------- excitation FC: tiny (B,C)x(C,Cr) matmuls, keep off the kernel --
    p = pooled.reshape(B, C)
    h = jnp.maximum(p @ w1 + b1, 0.0)
    y = jax.nn.sigmoid(h @ w2 + b2)
    # Hoist the broadcast/cast out of the kernel: one (B, C, 1) scale in x dtype.
    scale = y.astype(x.dtype).reshape(B, C, 1)

    # -------- pass 2: rescale (fully parallel, lane-dense output tiles) ------
    out = pl.pallas_call(
        _scale_kernel,
        out_shape=jax.ShapeDtypeStruct((B, C, HW), x.dtype),
        grid=(B, num_t),
        in_specs=[
            pl.BlockSpec((1, C, thw), lambda b, t: (b, 0, t)),
            pl.BlockSpec((1, C, 1), lambda b, t: (b, 0, 0)),
        ],
        out_specs=pl.BlockSpec((1, C, thw), lambda b, t: (b, 0, t)),
        compiler_params=pltpu.CompilerParams(
            dimension_semantics=("parallel", "parallel"),
            vmem_limit_bytes=vmem_bytes,
        ),
    )(x3, scale)

    return out.reshape(B, C, H, W)


# ---------------------------------------------------------------------------
# Params / reference
# ---------------------------------------------------------------------------
def init_params(key, channels, reduction=16):
    """torch.nn.Linear-style init (uniform +-1/sqrt(fan_in)); weights stored
    pre-transposed as (in_features, out_features)."""
    cr = channels // reduction
    k1, k2, k3, k4 = jax.random.split(key, 4)
    bound1 = 1.0 / jnp.sqrt(channels)
    bound2 = 1.0 / jnp.sqrt(cr)
    w1 = jax.random.uniform(k1, (channels, cr), jnp.float32, -bound1, bound1)
    b1 = jax.random.uniform(k2, (cr,), jnp.float32, -bound1, bound1)
    w2 = jax.random.uniform(k3, (cr, channels), jnp.float32, -bound2, bound2)
    b2 = jax.random.uniform(k4, (channels,), jnp.float32, -bound2, bound2)
    return w1, b1, w2, b2


def se_block_reference(x, w1, b1, w2, b2):
    pooled = jnp.mean(x, axis=(2, 3))
    h = jnp.maximum(pooled @ w1 + b1, 0.0)
    y = jax.nn.sigmoid(h @ w2 + b2)
    return x * y[:, :, None, None]


if __name__ == "__main__":
    key = jax.random.PRNGKey(0)
    kx, kp = jax.random.split(key)

    # channels=32 with reduction=16 -> hidden=2 (matches nn.Linear(c, c//16))
    B, C, H, W = 2, 32, 16, 16
    x = jax.random.normal(kx, (B, C, H, W), dtype=jnp.float32)
    w1, b1, w2, b2 = init_params(kp, C, reduction=16)

    ref = se_block_reference(x, w1, b1, w2, b2)

    # Default path (auto-sized spatial tile).
    out = jax.block_until_ready(se_block_forward(x, w1, b1, w2, b2))
    assert out.shape == (B, C, H, W)
    assert jnp.allclose(out, ref, atol=1e-5, rtol=1e-5)

    # Forced multi-tile path: exercises the cross-tile pooled-sum accumulator
    # and the pipelined, parallel rescale grid.
    out_tiled = jax.block_until_ready(
        se_block_forward(x, w1, b1, w2, b2, hw_tile=128))
    assert jnp.allclose(out_tiled, ref, atol=1e-5, rtol=1e-5)

    print("KERNEL_OK")
</pallas_src>

<mosaic_0001>
module attributes {stable_mosaic.version = 11 : i64} {
  func.func @_pool_kernel(%arg0: i32, %arg1: i32, %arg2: memref<1x32x256xf32, #tpu.memory_space<vmem>>, %arg3: memref<1x32x1xf32, #tpu.memory_space<vmem>>) attributes {dimension_semantics = [#tpu.dimension_semantics<parallel>, #tpu.dimension_semantics<arbitrary>], iteration_bounds = array<i64: 2, 1>, scalar_prefetch = 0 : i64, scratch_operands = 0 : i64, tpu.core_type = #tpu.core_type<tc>, window_params = [{transform_indices = @transform_0, window_bounds = array<i64: 1, 32, 256>}, {transform_indices = @transform_1, window_bounds = array<i64: 1, 32, 1>}]} {
    %c0_i32 = arith.constant 0 : i32
    %0 = arith.cmpi eq, %arg1, %c0_i32 : i32
    %1 = arith.extui %0 : i1 to i32
    %c0_i32_0 = arith.constant 0 : i32
    %2 = arith.cmpi ne, %1, %c0_i32_0 : i32
    scf.if %2 {
      %cst_11 = arith.constant 0.000000e+00 : f32
      %12 = vector.broadcast %cst_11 : f32 to vector<1x32x1xf32>
      %c0_12 = arith.constant 0 : index
      %c0_13 = arith.constant 0 : index
      %c0_14 = arith.constant 0 : index
      %13 = vector.load %arg3[%c0_12, %c0_13, %c0_14] : memref<1x32x1xf32, #tpu.memory_space<vmem>>, vector<1x32x1xf32>
      tpu.vector_store %arg3[%c0_12, %c0_13, %c0_14], %12 {strides = array<i32>} : memref<1x32x1xf32, #tpu.memory_space<vmem>>, vector<1x32x1xf32>,
    } else {
    }
    %c0 = arith.constant 0 : index
    %c0_1 = arith.constant 0 : index
    %c0_2 = arith.constant 0 : index
    %3 = vector.load %arg3[%c0, %c0_1, %c0_2] : memref<1x32x1xf32, #tpu.memory_space<vmem>>, vector<1x32x1xf32>
    %c0_3 = arith.constant 0 : index
    %c0_4 = arith.constant 0 : index
    %c0_5 = arith.constant 0 : index
    %4 = vector.load %arg2[%c0_3, %c0_4, %c0_5] : memref<1x32x256xf32, #tpu.memory_space<vmem>>, vector<1x32x256xf32>
    %cst = arith.constant dense<0.000000e+00> : vector<1x32xf32>
    %5 = vector.multi_reduction <add>, %4, %cst [2] : vector<1x32x256xf32> to vector<1x32xf32>
    %6 = vector.shape_cast %5 : vector<1x32xf32> to vector<1x32x1xf32>
    %7 = arith.addf %3, %6 : vector<1x32x1xf32>
    %c0_6 = arith.constant 0 : index
    %c0_7 = arith.constant 0 : index
    %c0_8 = arith.constant 0 : index
    %8 = vector.load %arg3[%c0_6, %c0_7, %c0_8] : memref<1x32x1xf32, #tpu.memory_space<vmem>>, vector<1x32x1xf32>
    tpu.vector_store %arg3[%c0_6, %c0_7, %c0_8], %7 {strides = array<i32>} : memref<1x32x1xf32, #tpu.memory_space<vmem>>, vector<1x32x1xf32>,
    %c0_i32_9 = arith.constant 0 : i32
    %9 = arith.cmpi eq, %arg1, %c0_i32_9 : i32
    %10 = arith.extui %9 : i1 to i32
    %c0_i32_10 = arith.constant 0 : i32
    %11 = arith.cmpi ne, %10, %c0_i32_10 : i32
    scf.if %11 {
      %c0_11 = arith.constant 0 : index
      %c0_12 = arith.constant 0 : index
      %c0_13 = arith.constant 0 : index
      %12 = vector.load %arg3[%c0_11, %c0_12, %c0_13] : memref<1x32x1xf32, #tpu.memory_space<vmem>>, vector<1x32x1xf32>
      %cst_14 = arith.constant 3.906250e-03 : f32
      %13 = vector.broadcast %cst_14 : f32 to vector<1x32x1xf32>
      %14 = arith.mulf %12, %13 : vector<1x32x1xf32>
      %c0_15 = arith.constant 0 : index
      %c0_16 = arith.constant 0 : index
      %c0_17 = arith.constant 0 : index
      %15 = vector.load %arg3[%c0_15, %c0_16, %c0_17] : memref<1x32x1xf32, #tpu.memory_space<vmem>>, vector<1x32x1xf32>
      tpu.vector_store %arg3[%c0_15, %c0_16, %c0_17], %14 {strides = array<i32>} : memref<1x32x1xf32, #tpu.memory_space<vmem>>, vector<1x32x1xf32>,
    } else {
    }
    return
  }
  func.func @transform_0(%arg0: i32, %arg1: i32) -> (i32, i32, i32) {
    %c0_i32 = arith.constant 0 : i32
    %c0_i32_0 = arith.constant 0 : i32
    return %arg0, %c0_i32, %arg1 : i32, i32, i32
  }
  func.func @transform_1(%arg0: i32, %arg1: i32) -> (i32, i32, i32) {
    %c0_i32 = arith.constant 0 : i32
    %c0_i32_0 = arith.constant 0 : i32
    %c0_i32_1 = arith.constant 0 : i32
    return %arg0, %c0_i32, %c0_i32_0 : i32, i32, i32
  }
}

</mosaic_0001>

<bundles_post_ra>
// kernel: tpu_custom_call.1
= control target key start
LH: loop header
LB: loop body
LE: loop exit
PB: predicated region body
PF: predicated region fallthrough
CT: control target
= control target key end

     0   :  { %6 = vsyncpa [#allocation3], 0  ;;  %s581_s0 = inlined_call_operand.hbm [shape: f32[2,32,256], index: 0, kind: input, shape index: {}]   ;;  %s582_s1 = inlined_call_operand.vmem [shape: f32[2,32,1], index: 1, kind: output, shape index: {}]  }
   0x1   :  { %8 = vsyncpa [#allocation3 + $0x1], 0  ;;  %s459_s6 = smov 0   ;;  %s461_s7 = smov 0  }
   0x2   :  { %s463_s8 = smov 0   ;;  %s465_s9 = smov 0  }
   0x3   :  { %s467_s10 = smov 0   ;;  %s469_s11 = smov 0  }
   0x4 LB: > { %s291_s12 = sadd.s32 4294967295, %s444_s11   ;;  %s26_s13 = sadd.s32 1, %s440_s10  ;;  %s444_s11 = sphi %s469_s11, %s14_s11   ;;  %s440_s10 = sphi %s467_s10, %s589_s10   ;;  %s436_s9 = sphi %s465_s9, %s588_s9   ;;  %s432_s8 = sphi %s463_s8, %s587_s8   ;;  %s428_s7 = sphi %s461_s7, %s586_s7   ;;  %s424_s6 = sphi %s459_s6, %s585_s6  }
   0x5   : > { %p28_p0 = scmp.ge.s32.totalorder %s26_s13, 2  ;;  %s35_s14 = sadd.s32 1, %s432_s8 }
   0x6   : > { %p42_p1 = scmp.ne.s32.totalorder %s432_s8, %s428_s7  ;;  %p43_p2 = scmp.eq.s32.totalorder %s444_s11, 0 }
   0x7   : > { %s591_s13 = smov (%p28_p0, %s26_s13), 0  ;;  %p48_p4 = scmp.ne.s32.totalorder %s428_s7, %s424_s6 }
   0x8   : > { %p495_p3 = por %p43_p2, %p42_p1  ;;  %s30_s16 = ssub.s32 %s440_s10, %s591_s13 }
   0x9   : > { %p49_p5 = scmp.eq.s32.totalorder %s291_s12, 0  ;;  %p33_p6 = scmp.eq.s32.totalorder %s30_s16, 0 }
   0xa   : > { %p312_p8 = scmp.lt.s32.totalorder %s444_s11, 2  ;;  %s98_s19 = sand.u32 1, %s432_s8  }
   0xb   : > { %p502_p7 = por %p49_p5, %p48_p4  ;;  %s304_s20 = sshll.u32 %s440_s10, 6 }
   0xc   : > { %s508_s18 = scalar_select %p33_p6, %s432_s8, %s35_s14  }
   0xd   : > { %s295_s21 = sshll.u32 %s98_s19, 6  ;;  %s109_s24 = scalar_lea.hbm %s581_s0, %s304_s20 }
   0xe   : > { %s110_s25 = sshll.u32 %s109_s24, 4  ;;  %s102_s26 = scalar_lea.vmem [#allocation2], %s295_s21  ;;  %s111_s25 = int_to_ptr.hbm [resolvable:$true] %s110_s25 }
   0xf   : > { %s112_s27 = sshll.u32 %s102_s26, 4  ;;  %p309_p9 = pnand %p312_p8, %p495_p3  ;;  %s113_s27 = int_to_ptr.vmem [resolvable:$true] %s112_s27 }
  0x10   : > { %p298_p10 = scmp.ge.s32.totalorder %s444_s11, 1  ;;  %p120_p11 = scmp.lt.s32.totalorder %s444_s11, 3 }
  0x11   : > { %s99_s28 = scalar_lea.sflag [#allocation3], %s98_s19  ;;  %s446_s29 = smov 256  }
  0x12   : > { %s447_s30 = smov 16   ;;  %p121_p12 = pnand %p298_p10, %p120_p11 }
  0x13   : > { %311 = dma.hbm_to_vmem [thread:$0]  (!%p309_p9), %s111_s25, 1024, %s113_s27, %s99_s28, %s446_s29, %s446_s29, %s447_s30  }
  0x14   : > { %124 = sbr.rel (%p121_p12) target bundleno = 167 (0xa7), region = 24  ;;  %s126_s2 = sand.u32 (!%p121_p12), 1, %s428_s7  }
  0x15   : > { %s299_s3 = sshll.u32 (!%p121_p12), %s126_s2, 6  ;;  %s127_s4 = scalar_lea.sflag (!%p121_p12), [#allocation3], %s126_s2 }
  0x16   : > { %s130_s5 = scalar_lea.vmem (!%p121_p12), [#allocation2], %s299_s3 }
  0x19   : > { %419 = dma.done.wait (%p502_p7), %s127_s4, 1024  }
  0x1a   : > { %421 = vsyncadd (%p502_p7), %s127_s4, 4294966272  ;;  %p151_p13 = scmp.lt.s32.totalorder %s436_s9, 1  ;;  %vm160_vm0 = vcmask 7168   ;;  %v448_v0 = vmov 0.0   ;;  %v173_v1 = vld [vmem:[%s130_s5 + $0x20] sm:$0xff]  ;;  %v174_v2 = vld [vmem:[%s130_s5 + $0x28] sm:$0xff] }
  0x1b   : > { %v169_v3 = vld [vmem:[%s130_s5] sm:$0xff]  ;;  %v183_v4 = vadd.f32 %v174_v2, %v173_v1  ;;  %v170_v5 = vld [vmem:[%s130_s5 + $0x8] sm:$0xff]  ;;  %v175_v7 = vld [vmem:[%s130_s5 + $0x30] sm:$0xff] }
  0x1c   : > { %s593_s9 = smov (!%p151_p13, %s436_s9), 1  ;;  %v177_v6 = vadd.f32 %v170_v5, %v169_v3  ;;  %v176_v8 = vld [vmem:[%s130_s5 + $0x38] sm:$0xff]  ;;  %v171_v9 = vld [vmem:[%s130_s5 + $0x10] sm:$0xff] }
  0x1d   : > { %s305_s6 = sshll.u32 %s593_s9, 5  ;;  %184 = vadd.xlane.f32.xlu1 %v183_v4  ;;  %v172_v10 = vld [vmem:[%s130_s5 + $0x18] sm:$0xff]  ;;  %v186_v11 = vadd.f32 %v176_v8, %v175_v7 }
  0x1e   : > { %s529_s15 = scalar_lea.vmem %s582_s1, %s305_s6  ;;  %178 = vadd.xlane.f32.xlu0 %v177_v6  ;;  %v180_v12 = vadd.f32 %v172_v10, %v171_v9 }
  0x1f   : > { %163 = vst.msk [vmem:[%s529_s15 + $0x10] sm:$0xff] %vm160_vm0, %v448_v0 }
  0x20   : > { %161 = vst.msk [vmem:[%s529_s15] sm:$0xff] %vm160_vm0, %v448_v0 }
  0x21   : > { %162 = vst.msk [vmem:[%s529_s15 + $0x8] sm:$0xff] %vm160_vm0, %v448_v0 }
  0x22   : > { %164 = vst.msk [vmem:[%s529_s15 + $0x18] sm:$0xff] %vm160_vm0, %v448_v0 }
  0x25   : > { %187 = vadd.xlane.f32.xlu1 %v186_v11 }
  0x26   : > { %181 = vadd.xlane.f32.xlu0 %v180_v12  ;;  %v167_v13 = vld [vmem:[%s529_s15 + $0x10] sm:$0xff] }
  0x27   : > { %v165_v14 = vld [vmem:[%s529_s15] sm:$0xff] }
  0x28   : > { %v166_v20 = vld [vmem:[%s529_s15 + $0x8] sm:$0xff] }
  0x29   : > { %v168_v19 = vld [vmem:[%s529_s15 + $0x18] sm:$0xff] }
  0x90   : > { %v185_v15 = vpop.xlane.xlu1 %184 }
  0x91   : > { %v191_v16 = vadd.f32 %v185_v15, %v167_v13  ;;  %v179_v17 = vpop.xlane.xlu0 %178 }
  0x92   : > { %v189_v18 = vadd.f32 %v179_v17, %v165_v14 }
  0x93   : > { %196 = vst.msk [vmem:[%s529_s15 + $0x10] sm:$0xff] %vm160_vm0, %v191_v16 }
  0x94   : > { %194 = vst.msk [vmem:[%s529_s15] sm:$0xff] %vm160_vm0, %v189_v18 }
  0x98   : > { %v188_v21 = vpop.xlane.xlu1 %187 }
  0x99   : > { %v192_v22 = vadd.f32 %v188_v21, %v168_v19  ;;  %v182_v23 = vpop.xlane.xlu0 %181 }
  0x9a   : > { %v203_v24 = vld [vmem:[%s529_s15 + $0x10] sm:$0xff]  ;;  %v190_v25 = vadd.f32 %v182_v23, %v166_v20 }
  0x9b   : > { %v207_v26 = vmul.f32 0.00390625, %v203_v24  ;;  %v201_v27 = vld [vmem:[%s529_s15] sm:$0xff]  ;;  %197 = vst.msk [vmem:[%s529_s15 + $0x18] sm:$0xff] %vm160_vm0, %v192_v22 }
  0x9c   : > { %v205_v28 = vmul.f32 0.00390625, %v201_v27  ;;  %195 = vst.msk [vmem:[%s529_s15 + $0x8] sm:$0xff] %vm160_vm0, %v190_v25 }
  0x9d   : > { %211 = vst.msk [vmem:[%s529_s15 + $0x10] sm:$0xff] %vm160_vm0, %v207_v26 }
  0x9e   : > { %209 = vst.msk [vmem:[%s529_s15] sm:$0xff] %vm160_vm0, %v205_v28 }
  0xa2   : > { %v204_v29 = vld [vmem:[%s529_s15 + $0x18] sm:$0xff] }
  0xa3   : > { %v208_v30 = vmul.f32 0.00390625, %v204_v29  ;;  %v202_v31 = vld [vmem:[%s529_s15 + $0x8] sm:$0xff] }
  0xa4   : > { %v206_v32 = vmul.f32 0.00390625, %v202_v31 }
  0xa5   : > { %212 = vst.msk [vmem:[%s529_s15 + $0x18] sm:$0xff] %vm160_vm0, %v208_v30 }
  0xa6   : > { %210 = vst.msk [vmem:[%s529_s15 + $0x8] sm:$0xff] %vm160_vm0, %v206_v32 }
  0xa7 PF: > { %s14_s11 = sadd.s32 1, %s444_s11   ;;  %s585_s6 = smov %s428_s7 }
  0xa8   : > { %p11_p0 = scmp.ge.s32.totalorder %s14_s11, 4   ;;  %s586_s7 = smov %s432_s8 }
  0xa9   : > { %s587_s8 = smov %s508_s18  ;;  %s588_s9 = smov %s440_s10 }
  0xaa   : > { %s589_s10 = smov %s591_s13  ;;  %13 = sbr.rel (!%p11_p0) target bundleno = 4 (0x4), region = 72 }
  0xaf   :  { %234 = vsyncpa [#allocation3], 1 }
  0xb0   :  { %236 = vsyncpa [#allocation3 + $0x1], 1 }

</bundles_post_ra>
